<compile_context>
chip_gen: v6e
topology: v6e:2x2x1
jax: 0.10.0
libtpu: 0.0.40
codegen_flags: <defaults>
</compile_context>

<pallas_src>
import functools
import math

import jax
import jax.numpy as jnp
from jax import lax
from jax.experimental import pallas as pl
from jax.experimental.pallas import tpu as pltpu  # noqa: F401  (TPU backend)


# ------------------------------ in-kernel helpers ---------------------------

def _layernorm(x, g, b, eps=1e-5):
    mu = jnp.mean(x, axis=-1, keepdims=True)
    var = jnp.mean((x - mu) ** 2, axis=-1, keepdims=True)
    return (x - mu) * lax.rsqrt(var + eps) * g + b


# ------------------------------ Pallas kernels ------------------------------

def _text_branch_kernel(sd_ref, w_ref, b_ref, g_ref, be_ref,
                        sens_ref, nrm_ref, *, ln_eps, cos_eps):
    """text_to_shared_net: Linear(1024->nhid) + ReLU + LayerNorm (+ row norms)."""
    s = jnp.dot(sd_ref[...], w_ref[...], preferred_element_type=jnp.float32)
    s = jnp.maximum(s + b_ref[...], 0.0)
    s = _layernorm(s, g_ref[...], be_ref[...], ln_eps)
    sens_ref[...] = s
    n = jnp.sqrt(jnp.sum(s * s, axis=-1, keepdims=True))
    nrm_ref[...] = jnp.maximum(n, cos_eps)


def _gzsl_fused_kernel(
        x_ref,                                   # (B*S, IN)   batch-major rows
        trunk_w_ref, trunk_b_ref, pe_ref,        # (IN,E) (1,E) (B*S,E)
        wq_ref, wk_ref, wv_ref,                  # (H, E, Dh)
        bq_ref, bk_ref, bv_ref,                  # (H, 1, Dh)
        wo_ref, bo_ref,                          # (H, Dh, E) (1,E)
        ln1_g_ref, ln1_b_ref,                    # (1,E)
        ff1_w_ref, ff1_b_ref,                    # (E,NH) (1,NH)
        ff2_w_ref, ff2_b_ref,                    # (NH,E) (1,E)
        ln2_g_ref, ln2_b_ref,                    # (1,E)
        down_w_ref, down_b_ref,                  # (E,IN) (1,IN)   (batch_norm folded)
        dbn_s_ref, dbn_t_ref,                    # (1,IN)          (down_bn, eval)
        seq_w_ref, seq_b_ref,                    # (S,NH) (1,NH)
        sbn_s_ref, sbn_t_ref,                    # (1,NH)          (seq_bn, eval)
        sens_ref, sens_nrm_ref,                  # (IN,NH) (1,IN)  (precomputed)
        o_ref,                                   # (B, IN, IN)
        *, batch, seq, nhead, inv_temp, cos_eps):
    B, S, H = batch, seq, nhead
    dh = wq_ref.shape[2]
    scale = 1.0 / math.sqrt(dh)
    f32 = jnp.float32

    # --- trunk: Linear (trunk_bn1 & trunk_bn2 folded) + positional enc. -----
    h = jnp.dot(x_ref[...], trunk_w_ref[...], preferred_element_type=f32)
    h = h + trunk_b_ref[...] + pe_ref[...]                        # (B*S, E)

    # --- transformer encoder layer (post-norm), heads & batches unrolled ----
    # TODO(synk): custom `transformer` module is not provided; a standard
    # post-norm TransformerEncoderLayer is assumed (attention weights unused).
    ctx_rows = [None] * B
    for hd in range(H):
        q = jnp.dot(h, wq_ref[hd], preferred_element_type=f32) + bq_ref[hd]
        k = jnp.dot(h, wk_ref[hd], preferred_element_type=f32) + bk_ref[hd]
        v = jnp.dot(h, wv_ref[hd], preferred_element_type=f32) + bv_ref[hd]
        wo = wo_ref[hd]
        for b in range(B):
            sl = slice(b * S, (b + 1) * S)                        # sublane-aligned
            s = lax.dot_general(q[sl], k[sl], (((1,), (1,)), ((), ())),
                                preferred_element_type=f32) * scale
            s = s - jnp.max(s, axis=-1, keepdims=True)
            p = jnp.exp(s)
            p = p / jnp.sum(p, axis=-1, keepdims=True)
            ctx = jnp.dot(p, v[sl], preferred_element_type=f32)    # (S, Dh)
            contrib = jnp.dot(ctx, wo, preferred_element_type=f32)  # (S, E)
            ctx_rows[b] = contrib if ctx_rows[b] is None else ctx_rows[b] + contrib
    attn_o = jnp.concatenate(ctx_rows, axis=0) + bo_ref[...]       # (B*S, E)

    h1 = _layernorm(h + attn_o, ln1_g_ref[...], ln1_b_ref[...])
    f = jnp.dot(h1, ff1_w_ref[...], preferred_element_type=f32) + ff1_b_ref[...]
    f = jnp.maximum(f, 0.0)
    f = jnp.dot(f, ff2_w_ref[...], preferred_element_type=f32) + ff2_b_ref[...]
    h2 = _layernorm(h1 + f, ln2_g_ref[...], ln2_b_ref[...])        # (B*S, E)

    # --- downsample head (outer batch_norm folded into down_w / down_b) -----
    z = jnp.dot(h2, down_w_ref[...], preferred_element_type=f32) + down_b_ref[...]
    z = jnp.maximum(z, 0.0)
    z = z * dbn_s_ref[...] + dbn_t_ref[...]                        # (B*S, IN)

    # --- sequence head + cosine similarity against precomputed sensors ------
    sens = sens_ref[...]                                           # (IN, NH)
    ns = sens_nrm_ref[...]                                         # (1, IN), clamped
    for b in range(B):
        zb = z[b * S:(b + 1) * S, :]                               # (S, IN)
        m = lax.dot_general(zb, seq_w_ref[...], (((0,), (0,)), ((), ())),
                            preferred_element_type=f32)            # (IN, NH)
        m = jnp.maximum(m + seq_b_ref[...], 0.0)
        imu = m * sbn_s_ref[...] + sbn_t_ref[...]                  # (IN, NH)
        dots = lax.dot_general(imu, sens, (((1,), (1,)), ((), ())),
                               preferred_element_type=f32)         # (IN, IN)
        ni = jnp.sqrt(jnp.sum(imu * imu, axis=-1, keepdims=True))  # (IN, 1)
        denom = jnp.maximum(ni, cos_eps) * ns                      # (IN, IN)
        o_ref[b] = dots / denom * inv_temp


# ------------------------------ wrappers ------------------------------------

def text_to_shared_pallas(sensor_desc, w, b, g, beta, *, ln_eps=1e-5, cos_eps=1e-8):
    """Precompute sensors in the shared space and their clamped norms (once)."""
    n = sensor_desc.shape[0]
    nh = w.shape[1]
    sens, nrm = pl.pallas_call(
        functools.partial(_text_branch_kernel, ln_eps=ln_eps, cos_eps=cos_eps),
        out_shape=(jax.ShapeDtypeStruct((n, nh), jnp.float32),
                   jax.ShapeDtypeStruct((n, 1), jnp.float32)),
    )(sensor_desc, w, b.reshape(1, nh), g.reshape(1, nh), beta.reshape(1, nh))
    return sens, jnp.transpose(nrm)            # (n, nh), (1, n)


def _split_heads(w_full, b_full, nhead, dh):
    w = jnp.stack([w_full[:, h * dh:(h + 1) * dh] for h in range(nhead)])
    b = jnp.stack([b_full[h * dh:(h + 1) * dh].reshape(1, dh) for h in range(nhead)])
    return w, b


def prepare_inference_params(params, sensor_desc, *, batch, seq_len, nhead):
    """Fold eval-mode BatchNorms, pre-split heads, precompute the text branch."""
    IN, E = params['trunk_lin_w'].shape
    NH = params['seq_w'].shape[1]
    dh = E // nhead

    # trunk: Linear + BN1 + PE + BN2  ->  Linear' + PE'
    s1, t1 = params['trunk_bn1']
    s2, t2 = params['trunk_bn2']
    trunk_w = params['trunk_lin_w'] * (s1 * s2)[None, :]
    trunk_b = ((params['trunk_lin_b'] * s1 + t1) * s2).reshape(1, E)
    pe = params['pe'][:seq_len, 0, :] * s2[None, :] + t2[None, :]    # (S, E)
    pe = jnp.tile(pe, (batch, 1))                                    # (B*S, E)

    enc = params['enc0']
    iw, ib = enc['in_proj_w'], enc['in_proj_b']
    wq, bq = _split_heads(iw[:, :E], ib[:E], nhead, dh)
    wk, bk = _split_heads(iw[:, E:2 * E], ib[E:2 * E], nhead, dh)
    wv, bv = _split_heads(iw[:, 2 * E:], ib[2 * E:], nhead, dh)
    wo = jnp.stack([enc['out_proj_w'][h * dh:(h + 1) * dh, :] for h in range(nhead)])
    bo = enc['out_proj_b'].reshape(1, E)

    # outer batch_norm (over E) folded into the downsample linear
    sB, tB = params['bn']
    down_w = sB[:, None] * params['down_w']
    down_b = (params['down_b'] + tB @ params['down_w']).reshape(1, IN)
    dbn_s, dbn_t = (a.reshape(1, IN) for a in params['down_bn'])
    sbn_s, sbn_t = (a.reshape(1, NH) for a in params['seq_bn'])

    # text branch (independent of x): precompute once
    sens, sens_nrm = text_to_shared_pallas(
        sensor_desc, params['text_w'], params['text_b'],
        params['text_ln_g'], params['text_ln_b'])

    return (trunk_w, trunk_b, pe,
            wq, wk, wv, bq, bk, bv, wo, bo,
            enc['ln1_g'].reshape(1, E), enc['ln1_b'].reshape(1, E),
            enc['lin1_w'], enc['lin1_b'].reshape(1, NH),
            enc['lin2_w'], enc['lin2_b'].reshape(1, E),
            enc['ln2_g'].reshape(1, E), enc['ln2_b'].reshape(1, E),
            down_w, down_b, dbn_s, dbn_t,
            params['seq_w'], params['seq_b'].reshape(1, NH), sbn_s, sbn_t,
            sens, sens_nrm)


def gzsl_forward_stage1(prep, x, *, nhead, temp=0.05, cos_eps=1e-8):
    """GZSLModel.forward with stage='1', pooling='mean' -> (B, IN, IN)."""
    B, S, IN = x.shape
    kern = functools.partial(_gzsl_fused_kernel, batch=B, seq=S, nhead=nhead,
                             inv_temp=1.0 / temp, cos_eps=cos_eps)
    return pl.pallas_call(
        kern, out_shape=jax.ShapeDtypeStruct((B, IN, IN), jnp.float32),
    )(x.reshape(B * S, IN), *prep)


# ------------------------------ parameter init ------------------------------

def make_positional_encoding(seq_len, d_model):
    max_len = max(5000, seq_len)
    pos = jnp.arange(max_len, dtype=jnp.float32)[:, None]
    div = jnp.exp(jnp.arange(0, d_model, 2, dtype=jnp.float32)
                  * (-math.log(10000.0) / d_model))
    pe = jnp.zeros((max_len, d_model), jnp.float32)
    pe = pe.at[:, 0::2].set(jnp.sin(pos * div))
    pe = pe.at[:, 1::2].set(jnp.cos(pos * div))            # d_model is even here
    return pe[:, None, :]                                  # (max_len, 1, d_model)


def init_params(key, *, input_size, emb_size, seq_len, nhid, word_dim):
    ks = iter(jax.random.split(key, 32))

    def lin(fan_in, fan_out):
        w = jax.random.normal(next(ks), (fan_in, fan_out), jnp.float32) / math.sqrt(fan_in)
        b = jax.random.normal(next(ks), (fan_out,), jnp.float32) * 0.02
        return w, b

    def bn(c):
        # eval-mode BatchNorm1d with default init (gamma=1, beta=0, rm=0, rv=1)
        eps = 1e-5
        return (jnp.ones((c,), jnp.float32) / jnp.sqrt(1.0 + eps),
                jnp.zeros((c,), jnp.float32))

    p = {}
    p['trunk_lin_w'], p['trunk_lin_b'] = lin(input_size, emb_size)
    p['trunk_bn1'] = bn(emb_size)
    p['trunk_bn2'] = bn(emb_size)
    p['pe'] = make_positional_encoding(seq_len, emb_size)

    enc = {}
    enc['in_proj_w'], enc['in_proj_b'] = lin(emb_size, 3 * emb_size)
    enc['out_proj_w'], enc['out_proj_b'] = lin(emb_size, emb_size)
    enc['lin1_w'], enc['lin1_b'] = lin(emb_size, nhid)
    enc['lin2_w'], enc['lin2_b'] = lin(nhid, emb_size)
    enc['ln1_g'] = jnp.ones((emb_size,), jnp.float32)
    enc['ln1_b'] = jnp.zeros((emb_size,), jnp.float32)
    enc['ln2_g'] = jnp.ones((emb_size,), jnp.float32)
    enc['ln2_b'] = jnp.zeros((emb_size,), jnp.float32)
    p['enc0'] = enc

    p['bn'] = bn(emb_size)
    p['down_w'], p['down_b'] = lin(emb_size, input_size)
    p['down_bn'] = bn(input_size)
    p['seq_w'], p['seq_b'] = lin(seq_len, nhid)
    p['seq_bn'] = bn(nhid)
    p['text_w'], p['text_b'] = lin(word_dim, nhid)
    p['text_ln_g'] = jnp.ones((nhid,), jnp.float32)
    p['text_ln_b'] = jnp.zeros((nhid,), jnp.float32)
    return p


# ----------------------------------- main -----------------------------------

if __name__ == "__main__":
    batch, seq_len, input_size = 2, 8, 6
    emb_size, nhead, nhid, nlayers = 16, 2, 32, 1
    word_dim = 1024   # sentence-embedding width expected by text_to_shared_net

    key = jax.random.PRNGKey(0)
    k_x, k_sd, k_p = jax.random.split(key, 3)

    x = jax.random.normal(k_x, (batch, seq_len, input_size), jnp.float32)
    # one 1024-d sensor description embedding per input channel
    sensor_desc = jax.random.normal(k_sd, (input_size, word_dim), jnp.float32)

    params = init_params(k_p, input_size=input_size, emb_size=emb_size,
                         seq_len=seq_len, nhid=nhid, word_dim=word_dim)

    # one-time prep: BN folding, per-head weight split, text-branch precompute
    prep = prepare_inference_params(params, sensor_desc,
                                    batch=batch, seq_len=seq_len, nhead=nhead)
    prep = jax.block_until_ready(prep)

    # per-inference path: a single fused Pallas kernel
    cos_sim = gzsl_forward_stage1(prep, x, nhead=nhead)
    cos_sim = jax.block_until_ready(cos_sim)

    assert cos_sim.shape == (batch, input_size, input_size)
    assert bool(jnp.all(jnp.isfinite(cos_sim)))
    print("KERNEL_OK")
</pallas_src>

<mosaic_0001>
module attributes {stable_mosaic.version = 11 : i64} {
  func.func @_text_branch_kernel(%arg0: memref<6x1024xf32, #tpu.memory_space<vmem>>, %arg1: memref<1024x32xf32, #tpu.memory_space<vmem>>, %arg2: memref<1x32xf32, #tpu.memory_space<vmem>>, %arg3: memref<1x32xf32, #tpu.memory_space<vmem>>, %arg4: memref<1x32xf32, #tpu.memory_space<vmem>>, %arg5: memref<6x32xf32, #tpu.memory_space<vmem>>, %arg6: memref<6x1xf32, #tpu.memory_space<vmem>>) attributes {dimension_semantics = [], scalar_prefetch = 0 : i64, scratch_operands = 0 : i64, tpu.core_type = #tpu.core_type<tc>} {
    %c0 = arith.constant 0 : index
    %c0_0 = arith.constant 0 : index
    %0 = vector.load %arg0[%c0, %c0_0] : memref<6x1024xf32, #tpu.memory_space<vmem>>, vector<6x1024xf32>
    %c0_1 = arith.constant 0 : index
    %c0_2 = arith.constant 0 : index
    %1 = vector.load %arg1[%c0_1, %c0_2] : memref<1024x32xf32, #tpu.memory_space<vmem>>, vector<1024x32xf32>
    %cst = arith.constant dense<0.000000e+00> : vector<6x32xf32>
    %2 = tpu.matmul %0, %1, %cst {dimension_numbers = #tpu.dot_dimension_numbers<[1], [0], [0], [1], [0, 0, 1, 1], [], []>} : vector<6x1024xf32>, vector<1024x32xf32>, vector<6x32xf32> -> vector<6x32xf32>
    %c0_3 = arith.constant 0 : index
    %c0_4 = arith.constant 0 : index
    %3 = vector.load %arg2[%c0_3, %c0_4] : memref<1x32xf32, #tpu.memory_space<vmem>>, vector<1x32xf32>
    %4 = vector.broadcast %3 : vector<1x32xf32> to vector<6x32xf32>
    %5 = arith.addf %2, %4 : vector<6x32xf32>
    %cst_5 = arith.constant 0.000000e+00 : f32
    %6 = vector.broadcast %cst_5 : f32 to vector<6x32xf32>
    %7 = arith.maximumf %5, %6 : vector<6x32xf32>
    %c0_6 = arith.constant 0 : index
    %c0_7 = arith.constant 0 : index
    %8 = vector.load %arg3[%c0_6, %c0_7] : memref<1x32xf32, #tpu.memory_space<vmem>>, vector<1x32xf32>
    %c0_8 = arith.constant 0 : index
    %c0_9 = arith.constant 0 : index
    %9 = vector.load %arg4[%c0_8, %c0_9] : memref<1x32xf32, #tpu.memory_space<vmem>>, vector<1x32xf32>
    %cst_10 = arith.constant dense<0.000000e+00> : vector<6xf32>
    %10 = vector.multi_reduction <add>, %7, %cst_10 [1] : vector<6x32xf32> to vector<6xf32>
    %11 = vector.shape_cast %10 : vector<6xf32> to vector<6x1xf32>
    %cst_11 = arith.constant 3.200000e+01 : f32
    %12 = vector.broadcast %cst_11 : f32 to vector<6x1xf32>
    %13 = arith.divf %11, %12 : vector<6x1xf32>
    %14 = vector.broadcast %13 : vector<6x1xf32> to vector<6x32xf32>
    %15 = arith.subf %7, %14 : vector<6x32xf32>
    %16 = arith.mulf %15, %15 : vector<6x32xf32>
    %cst_12 = arith.constant dense<0.000000e+00> : vector<6xf32>
    %17 = vector.multi_reduction <add>, %16, %cst_12 [1] : vector<6x32xf32> to vector<6xf32>
    %18 = vector.shape_cast %17 : vector<6xf32> to vector<6x1xf32>
    %cst_13 = arith.constant 3.200000e+01 : f32
    %19 = vector.broadcast %cst_13 : f32 to vector<6x1xf32>
    %20 = arith.divf %18, %19 : vector<6x1xf32>
    %21 = vector.broadcast %13 : vector<6x1xf32> to vector<6x32xf32>
    %22 = arith.subf %7, %21 : vector<6x32xf32>
    %cst_14 = arith.constant 9.99999974E-6 : f32
    %23 = vector.broadcast %cst_14 : f32 to vector<6x1xf32>
    %24 = arith.addf %20, %23 : vector<6x1xf32>
    %25 = math.rsqrt %24 : vector<6x1xf32>
    %26 = vector.broadcast %25 : vector<6x1xf32> to vector<6x32xf32>
    %27 = arith.mulf %22, %26 : vector<6x32xf32>
    %28 = vector.broadcast %8 : vector<1x32xf32> to vector<6x32xf32>
    %29 = arith.mulf %27, %28 : vector<6x32xf32>
    %30 = vector.broadcast %9 : vector<1x32xf32> to vector<6x32xf32>
    %31 = arith.addf %29, %30 : vector<6x32xf32>
    %c0_15 = arith.constant 0 : index
    %c0_16 = arith.constant 0 : index
    %32 = vector.load %arg5[%c0_15, %c0_16] : memref<6x32xf32, #tpu.memory_space<vmem>>, vector<6x32xf32>
    tpu.vector_store %arg5[%c0_15, %c0_16], %31 {strides = array<i32>} : memref<6x32xf32, #tpu.memory_space<vmem>>, vector<6x32xf32>,
    %33 = arith.mulf %31, %31 : vector<6x32xf32>
    %cst_17 = arith.constant dense<0.000000e+00> : vector<6xf32>
    %34 = vector.multi_reduction <add>, %33, %cst_17 [1] : vector<6x32xf32> to vector<6xf32>
    %35 = vector.shape_cast %34 : vector<6xf32> to vector<6x1xf32>
    %36 = math.sqrt %35 : vector<6x1xf32>
    %cst_18 = arith.constant 9.99999993E-9 : f32
    %37 = vector.broadcast %cst_18 : f32 to vector<6x1xf32>
    %38 = arith.maximumf %36, %37 : vector<6x1xf32>
    %c0_19 = arith.constant 0 : index
    %c0_20 = arith.constant 0 : index
    %39 = vector.load %arg6[%c0_19, %c0_20] : memref<6x1xf32, #tpu.memory_space<vmem>>, vector<6x1xf32>
    tpu.vector_store %arg6[%c0_19, %c0_20], %38 {strides = array<i32>} : memref<6x1xf32, #tpu.memory_space<vmem>>, vector<6x1xf32>,
    return
  }
}

</mosaic_0001>

<bundles_post_ra>
// kernel: tpu_custom_call.1
= control target key start
LH: loop header
LB: loop body
LE: loop exit
PB: predicated region body
PF: predicated region fallthrough
CT: control target
= control target key end

     0   :  { %s1144_s0 = inlined_call_operand.vmem [shape: f32[6,1024], index: 0, kind: input, shape index: {}]   ;;  %s1145_s1 = inlined_call_operand.vmem [shape: f32[1024,32], index: 1, kind: input, shape index: {}]   ;;  %s1146_s2 = inlined_call_operand.vmem [shape: f32[1,32], index: 2, kind: input, shape index: {}]   ;;  %s1147_s3 = inlined_call_operand.vmem [shape: f32[1,32], index: 3, kind: input, shape index: {}]   ;;  %s1148_s4 = inlined_call_operand.vmem [shape: f32[1,32], index: 4, kind: input, shape index: {}]   ;;  %s1149_s5 = inlined_call_operand.hbm [shape: f32[6,32], index: 5, kind: output, shape index: {0}]   ;;  %s1150_s6 = inlined_call_operand.vmem [shape: f32[6,1], index: 6, kind: output, shape index: {1}]  }
   0x1   :  { %v62_v0 = vld [vmem:[%s1145_s1 + $0xf8] sm:$0xff]  ;;  %v61_v4 = vld [vmem:[%s1145_s1 + $0xf0] sm:$0xff]  ;;  %v60_v8 = vld [vmem:[%s1145_s1 + $0xe8] sm:$0xff] }
   0x2   :  { %v94_v1 = vld [vmem:[%s1145_s1 + $0x1f8] sm:$0xff]  ;;  %514 = vmatprep.subr.mxu0 %v62_v0  ;;  %v93_v5 = vld [vmem:[%s1145_s1 + $0x1f0] sm:$0xff]  ;;  %v92_v9 = vld [vmem:[%s1145_s1 + $0x1e8] sm:$0xff] }
   0x3   :  { %v46_v2 = vld [vmem:[%s1145_s1 + $0x78] sm:$0xff]  ;;  %549 = vmatprep.subr.mxu1 %v94_v1  ;;  %v45_v6 = vld [vmem:[%s1145_s1 + $0x70] sm:$0xff]  ;;  %v44_v10 = vld [vmem:[%s1145_s1 + $0x68] sm:$0xff] }
   0x4   :  { %v78_v3 = vld [vmem:[%s1145_s1 + $0x178] sm:$0xff]  ;;  %515 = vmatpush3.msra.mxu0 %v46_v2  ;;  %v77_v7 = vld [vmem:[%s1145_s1 + $0x170] sm:$0xff]  ;;  %v76_v11 = vld [vmem:[%s1145_s1 + $0x168] sm:$0xff] }
   0x5   :  { %550 = vmatpush3.msra.mxu1 %v78_v3  ;;  %516 = vmatprep.subr.mxu0 %v61_v4  ;;  %v59_v12 = vld [vmem:[%s1145_s1 + $0xe0] sm:$0xff]  ;;  %v58_v16 = vld [vmem:[%s1145_s1 + $0xd8] sm:$0xff]  ;;  %v57_v20 = vld [vmem:[%s1145_s1 + $0xd0] sm:$0xff] }
   0x6   :  { %551 = vmatprep.subr.mxu1 %v93_v5  ;;  %517 = vmatpush3.msra.mxu0 %v45_v6  ;;  %v91_v13 = vld [vmem:[%s1145_s1 + $0x1e0] sm:$0xff]  ;;  %v90_v17 = vld [vmem:[%s1145_s1 + $0x1d8] sm:$0xff]  ;;  %v89_v21 = vld [vmem:[%s1145_s1 + $0x1d0] sm:$0xff] }
   0x7   :  { %552 = vmatpush3.msra.mxu1 %v77_v7  ;;  %518 = vmatprep.subr.mxu0 %v60_v8  ;;  %v43_v14 = vld [vmem:[%s1145_s1 + $0x60] sm:$0xff]  ;;  %v42_v18 = vld [vmem:[%s1145_s1 + $0x58] sm:$0xff]  ;;  %v41_v22 = vld [vmem:[%s1145_s1 + $0x50] sm:$0xff] }
   0x8   :  { %553 = vmatprep.subr.mxu1 %v92_v9  ;;  %v75_v15 = vld [vmem:[%s1145_s1 + $0x160] sm:$0xff]  ;;  %519 = vmatpush3.msra.mxu0 %v44_v10  ;;  %v74_v19 = vld [vmem:[%s1145_s1 + $0x158] sm:$0xff]  ;;  %v73_v23 = vld [vmem:[%s1145_s1 + $0x150] sm:$0xff] }
   0x9   :  { %554 = vmatpush3.msra.mxu1 %v76_v11  ;;  %520 = vmatprep.subr.mxu0 %v59_v12  ;;  %v56_v24 = vld [vmem:[%s1145_s1 + $0xc8] sm:$0xff]  ;;  %v55_v28 = vld [vmem:[%s1145_s1 + $0xc0] sm:$0xff]  ;;  %v54_v32 = vld [vmem:[%s1145_s1 + $0xb8] sm:$0xff] }
   0xa   :  { %555 = vmatprep.subr.mxu1 %v91_v13  ;;  %521 = vmatpush3.msra.mxu0 %v43_v14  ;;  %v88_v25 = vld [vmem:[%s1145_s1 + $0x1c8] sm:$0xff]  ;;  %v87_v29 = vld [vmem:[%s1145_s1 + $0x1c0] sm:$0xff]  ;;  %v86_v33 = vld [vmem:[%s1145_s1 + $0x1b8] sm:$0xff] }
   0xb   :  { %556 = vmatpush3.msra.mxu1 %v75_v15  ;;  %522 = vmatprep.subr.mxu0 %v58_v16  ;;  %v40_v26 = vld [vmem:[%s1145_s1 + $0x48] sm:$0xff]  ;;  %v39_v30 = vld [vmem:[%s1145_s1 + $0x40] sm:$0xff]  ;;  %v38_v34 = vld [vmem:[%s1145_s1 + $0x38] sm:$0xff] }
   0xc   :  { %557 = vmatprep.subr.mxu1 %v90_v17  ;;  %523 = vmatpush3.msra.mxu0 %v42_v18  ;;  %v72_v27 = vld [vmem:[%s1145_s1 + $0x148] sm:$0xff]  ;;  %v71_v31 = vld [vmem:[%s1145_s1 + $0x140] sm:$0xff]  ;;  %v70_v35 = vld [vmem:[%s1145_s1 + $0x138] sm:$0xff] }
   0xd   :  { %558 = vmatpush3.msra.mxu1 %v74_v19  ;;  %524 = vmatprep.subr.mxu0 %v57_v20  ;;  %v53_v36 = vld [vmem:[%s1145_s1 + $0xb0] sm:$0xff]  ;;  %v52_v40 = vld [vmem:[%s1145_s1 + $0xa8] sm:$0xff]  ;;  %v51_v44 = vld [vmem:[%s1145_s1 + $0xa0] sm:$0xff] }
   0xe   :  { %559 = vmatprep.subr.mxu1 %v89_v21  ;;  %525 = vmatpush3.msra.mxu0 %v41_v22  ;;  %v85_v37 = vld [vmem:[%s1145_s1 + $0x1b0] sm:$0xff]  ;;  %v84_v41 = vld [vmem:[%s1145_s1 + $0x1a8] sm:$0xff]  ;;  %v83_v45 = vld [vmem:[%s1145_s1 + $0x1a0] sm:$0xff] }
   0xf   :  { %560 = vmatpush3.msra.mxu1 %v73_v23  ;;  %526 = vmatprep.subr.mxu0 %v56_v24  ;;  %v37_v38 = vld [vmem:[%s1145_s1 + $0x30] sm:$0xff]  ;;  %v36_v42 = vld [vmem:[%s1145_s1 + $0x28] sm:$0xff]  ;;  %v35_v46 = vld [vmem:[%s1145_s1 + $0x20] sm:$0xff] }
  0x10   :  { %561 = vmatprep.subr.mxu1 %v88_v25  ;;  %527 = vmatpush3.msra.mxu0 %v40_v26  ;;  %v69_v39 = vld [vmem:[%s1145_s1 + $0x130] sm:$0xff]  ;;  %v68_v43 = vld [vmem:[%s1145_s1 + $0x128] sm:$0xff]  ;;  %v67_v47 = vld [vmem:[%s1145_s1 + $0x120] sm:$0xff] }
  0x11   :  { %562 = vmatpush3.msra.mxu1 %v72_v27  ;;  %528 = vmatprep.subr.mxu0 %v55_v28  ;;  %v50_v48 = vld [vmem:[%s1145_s1 + $0x98] sm:$0xff]  ;;  %v49_v52 = vld [vmem:[%s1145_s1 + $0x90] sm:$0xff]  ;;  %v48_v56 = vld [vmem:[%s1145_s1 + $0x88] sm:$0xff] }
  0x12   :  { %563 = vmatprep.subr.mxu1 %v87_v29  ;;  %529 = vmatpush3.msra.mxu0 %v39_v30  ;;  %v82_v49 = vld [vmem:[%s1145_s1 + $0x198] sm:$0xff]  ;;  %v81_v53 = vld [vmem:[%s1145_s1 + $0x190] sm:$0xff]  ;;  %v80_v57 = vld [vmem:[%s1145_s1 + $0x188] sm:$0xff] }
  0x13   :  { %564 = vmatpush3.msra.mxu1 %v71_v31  ;;  %530 = vmatprep.subr.mxu0 %v54_v32  ;;  %v34_v50 = vld [vmem:[%s1145_s1 + $0x18] sm:$0xff]  ;;  %v33_v54 = vld [vmem:[%s1145_s1 + $0x10] sm:$0xff]  ;;  %v32_v58 = vld [vmem:[%s1145_s1 + $0x8] sm:$0xff] }
  0x14   :  { %565 = vmatprep.subr.mxu1 %v86_v33  ;;  %531 = vmatpush3.msra.mxu0 %v38_v34  ;;  %v66_v51 = vld [vmem:[%s1145_s1 + $0x118] sm:$0xff]  ;;  %v65_v55 = vld [vmem:[%s1145_s1 + $0x110] sm:$0xff]  ;;  %v64_v59 = vld [vmem:[%s1145_s1 + $0x108] sm:$0xff] }
  0x15   :  { %566 = vmatpush3.msra.mxu1 %v70_v35  ;;  %532 = vmatprep.subr.mxu0 %v53_v36  ;;  %v47_v60 = vld [vmem:[%s1145_s1 + $0x80] sm:$0xff]  ;;  %v24_v63 = vld [vmem:[%s1144_s0 + $0x8] sm:$0x3f]  ;;  %v26_v2 = vld [vmem:[%s1144_s0 + $0x18] sm:$0x3f] }
  0x16   :  { %567 = vmatprep.subr.mxu1 %v85_v37  ;;  %533 = vmatpush3.msra.mxu0 %v37_v38  ;;  %v79_v61 = vld [vmem:[%s1145_s1 + $0x180] sm:$0xff]  ;;  %v126_v3 = vld [vmem:[%s1145_s1 + $0x2f8] sm:$0xff]  ;;  %v25_v5 = vld [vmem:[%s1144_s0 + $0x10] sm:$0x3f] }
  0x17   :  { %568 = vmatpush3.msra.mxu1 %v69_v39  ;;  %534 = vmatprep.subr.mxu0 %v52_v40  ;;  %v31_v62 = vld [vmem:[%s1145_s1] sm:$0xff]  ;;  %v158_v4 = vld [vmem:[%s1145_s1 + $0x3f8] sm:$0xff]  ;;  %v125_v8 = vld [vmem:[%s1145_s1 + $0x2f0] sm:$0xff] }
  0x18   :  { %569 = vmatprep.subr.mxu1 %v84_v41  ;;  %535 = vmatpush3.msra.mxu0 %v36_v42  ;;  %v63_v0 = vld [vmem:[%s1145_s1 + $0x100] sm:$0xff]  ;;  %v110_v6 = vld [vmem:[%s1145_s1 + $0x278] sm:$0xff]  ;;  %v157_v9 = vld [vmem:[%s1145_s1 + $0x3f0] sm:$0xff] }
  0x19   :  { %570 = vmatpush3.msra.mxu1 %v68_v43  ;;  %536 = vmatprep.subr.mxu0 %v51_v44  ;;  %v23_v1 = vld [vmem:[%s1144_s0] sm:$0x3f]  ;;  %v142_v7 = vld [vmem:[%s1145_s1 + $0x378] sm:$0xff]  ;;  %v109_v10 = vld [vmem:[%s1145_s1 + $0x270] sm:$0xff] }
  0x1a   :  { %571 = vmatprep.subr.mxu1 %v83_v45  ;;  %537 = vmatpush3.msra.mxu0 %v35_v46  ;;  %v141_v11 = vld [vmem:[%s1145_s1 + $0x370] sm:$0xff]  ;;  %v124_v12 = vld [vmem:[%s1145_s1 + $0x2e8] sm:$0xff]  ;;  %v123_v16 = vld [vmem:[%s1145_s1 + $0x2e0] sm:$0xff] }
  0x1b   :  { %572 = vmatpush3.msra.mxu1 %v67_v47  ;;  %538 = vmatprep.subr.mxu0 %v50_v48  ;;  %v156_v13 = vld [vmem:[%s1145_s1 + $0x3e8] sm:$0xff]  ;;  %v155_v17 = vld [vmem:[%s1145_s1 + $0x3e0] sm:$0xff]  ;;  %v122_v20 = vld [vmem:[%s1145_s1 + $0x2d8] sm:$0xff] }
  0x1c   :  { %573 = vmatprep.subr.mxu1 %v82_v49  ;;  %539 = vmatpush3.msra.mxu0 %v34_v50  ;;  %v108_v14 = vld [vmem:[%s1145_s1 + $0x268] sm:$0xff]  ;;  %v107_v18 = vld [vmem:[%s1145_s1 + $0x260] sm:$0xff]  ;;  %v154_v21 = vld [vmem:[%s1145_s1 + $0x3d8] sm:$0xff] }
  0x1d   :  { %574 = vmatpush3.msra.mxu1 %v66_v51  ;;  %540 = vmatprep.subr.mxu0 %v49_v52  ;;  %v140_v15 = vld [vmem:[%s1145_s1 + $0x368] sm:$0xff]  ;;  %v139_v19 = vld [vmem:[%s1145_s1 + $0x360] sm:$0xff]  ;;  %v106_v22 = vld [vmem:[%s1145_s1 + $0x258] sm:$0xff] }
  0x1e   :  { %575 = vmatprep.subr.mxu1 %v81_v53  ;;  %541 = vmatpush3.msra.mxu0 %v33_v54  ;;  %v138_v23 = vld [vmem:[%s1145_s1 + $0x358] sm:$0xff]  ;;  %v121_v24 = vld [vmem:[%s1145_s1 + $0x2d0] sm:$0xff]  ;;  %v120_v28 = vld [vmem:[%s1145_s1 + $0x2c8] sm:$0xff] }
  0x1f   :  { %576 = vmatpush3.msra.mxu1 %v65_v55  ;;  %542 = vmatprep.subr.mxu0 %v48_v56  ;;  %v153_v25 = vld [vmem:[%s1145_s1 + $0x3d0] sm:$0xff]  ;;  %v152_v29 = vld [vmem:[%s1145_s1 + $0x3c8] sm:$0xff] }
  0x20   :  { %577 = vmatprep.subr.mxu1 %v80_v57  ;;  %543 = vmatpush3.msra.mxu0 %v32_v58  ;;  %v105_v26 = vld [vmem:[%s1145_s1 + $0x250] sm:$0xff]  ;;  %v104_v30 = vld [vmem:[%s1145_s1 + $0x248] sm:$0xff] }
  0x21   :  { %578 = vmatpush3.msra.mxu1 %v64_v59  ;;  %544 = vmatprep.subr.mxu0 %v47_v60  ;;  %v137_v27 = vld [vmem:[%s1145_s1 + $0x350] sm:$0xff]  ;;  %v136_v31 = vld [vmem:[%s1145_s1 + $0x348] sm:$0xff] }
  0x22   :  { %579 = vmatprep.subr.mxu1 %v79_v61  ;;  %545 = vmatpush3.msra.mxu0 %v31_v62 }
  0x23   :  { %230 = vmatprep.mubr.f32.mxu0 %v24_v63  ;;  %580 = vmatpush3.msra.mxu1 %v63_v0 }
  0x24   :  { %231 = vmatmul.mubr.f32.vlgmr.msra.gmra.mxu0 %v23_v1  ;;  %300 = vmatprep.mubr.f32.mxu1 %v26_v2 }
  0x25   :  { %584 = vmatprep.subr.mxu0 %v126_v3  ;;  %619 = vmatprep.subr.mxu1 %v158_v4 }
  0x26   :  { %301 = vmatmul.mubr.f32.vlgmr.msra.gmra.mxu1 %v25_v5  ;;  %585 = vmatpush3.msra.mxu0 %v110_v6 }
  0x27   :  { %620 = vmatpush3.msra.mxu1 %v142_v7  ;;  %586 = vmatprep.subr.mxu0 %v125_v8 }
  0x28   :  { %621 = vmatprep.subr.mxu1 %v157_v9  ;;  %587 = vmatpush3.msra.mxu0 %v109_v10 }
  0x29   :  { %622 = vmatpush3.msra.mxu1 %v141_v11  ;;  %588 = vmatprep.subr.mxu0 %v124_v12 }
  0x2a   :  { %623 = vmatprep.subr.mxu1 %v156_v13  ;;  %589 = vmatpush3.msra.mxu0 %v108_v14 }
  0x2b   :  { %624 = vmatpush3.msra.mxu1 %v140_v15  ;;  %590 = vmatprep.subr.mxu0 %v123_v16 }
  0x2c   :  { %625 = vmatprep.subr.mxu1 %v155_v17  ;;  %591 = vmatpush3.msra.mxu0 %v107_v18 }
  0x2d   :  { %626 = vmatpush3.msra.mxu1 %v139_v19  ;;  %592 = vmatprep.subr.mxu0 %v122_v20 }
  0x2e   :  { %627 = vmatprep.subr.mxu1 %v154_v21  ;;  %593 = vmatpush3.msra.mxu0 %v106_v22 }
  0x2f   :  { %628 = vmatpush3.msra.mxu1 %v138_v23  ;;  %594 = vmatprep.subr.mxu0 %v121_v24 }
  0x30   :  { %629 = vmatprep.subr.mxu1 %v153_v25 }
  0x31   :  { %12 = vsyncpa [#allocation3], 0  ;;  %595 = vmatpush3.msra.mxu0 %v105_v26  ;;  %630 = vmatpush3.msra.mxu1 %v137_v27  ;;  %v119_v32 = vld [vmem:[%s1145_s1 + $0x2c0] sm:$0xff]  ;;  %v118_v36 = vld [vmem:[%s1145_s1 + $0x2b8] sm:$0xff]  ;;  %vm449_vm0 = vcmask 259072   ;;  %s681_s8 = smov [#allocation2]  }
  0x32   :  { %v151_v33 = vld [vmem:[%s1145_s1 + $0x3c0] sm:$0xff]  ;;  %596 = vmatprep.subr.mxu0 %v120_v28  ;;  %631 = vmatprep.subr.mxu1 %v152_v29  ;;  %v150_v37 = vld [vmem:[%s1145_s1 + $0x3b8] sm:$0xff]  ;;  %v117_v40 = vld [vmem:[%s1145_s1 + $0x2b0] sm:$0xff]  ;;  %s499_s9 = sshll.u32 %s681_s8, 4  ;;  %s500_s9 = int_to_ptr.vmem [resolvable:$true] %s499_s9 }
  0x33   :  { %v103_v34 = vld [vmem:[%s1145_s1 + $0x240] sm:$0xff]  ;;  %597 = vmatpush3.msra.mxu0 %v104_v30  ;;  %632 = vmatpush3.msra.mxu1 %v136_v31  ;;  %v102_v38 = vld [vmem:[%s1145_s1 + $0x238] sm:$0xff]  ;;  %v149_v41 = vld [vmem:[%s1145_s1 + $0x3b0] sm:$0xff]  ;;  %s659_s10 = scalar_lea.vmem %s500_s9, 128  ;;  %p664_p1 = scmp.lt.s32.totalorder %s500_s9, %s500_s9 }
  0x34   :  { %v135_v35 = vld [vmem:[%s1145_s1 + $0x340] sm:$0xff]  ;;  %598 = vmatprep.subr.mxu0 %v119_v32  ;;  %633 = vmatprep.subr.mxu1 %v151_v33  ;;  %v134_v39 = vld [vmem:[%s1145_s1 + $0x338] sm:$0xff]  ;;  %v101_v42 = vld [vmem:[%s1145_s1 + $0x230] sm:$0xff]  ;;  %p660_p0 = scmp.ne.s32.totalorder %s500_s9, %s659_s10  ;;  %p665_p2 = scmp.lt.s32.totalorder %s659_s10, %s659_s10 }
  0x35   :  { %599 = vmatpush3.msra.mxu0 %v103_v34  ;;  %634 = vmatpush3.msra.mxu1 %v135_v35  ;;  %v133_v43 = vld [vmem:[%s1145_s1 + $0x330] sm:$0xff]  ;;  %v116_v44 = vld [vmem:[%s1145_s1 + $0x2a8] sm:$0xff]  ;;  %v115_v48 = vld [vmem:[%s1145_s1 + $0x2a0] sm:$0xff] }
  0x36   :  { %600 = vmatprep.subr.mxu0 %v118_v36  ;;  %635 = vmatprep.subr.mxu1 %v150_v37  ;;  %v148_v45 = vld [vmem:[%s1145_s1 + $0x3a8] sm:$0xff]  ;;  %v147_v49 = vld [vmem:[%s1145_s1 + $0x3a0] sm:$0xff]  ;;  %v114_v52 = vld [vmem:[%s1145_s1 + $0x298] sm:$0xff]  ;;  %p666_p3 = por %p665_p2, %p664_p1 }
  0x37   :  { %601 = vmatpush3.msra.mxu0 %v102_v38  ;;  %636 = vmatpush3.msra.mxu1 %v134_v39  ;;  %v100_v46 = vld [vmem:[%s1145_s1 + $0x228] sm:$0xff]  ;;  %v99_v50 = vld [vmem:[%s1145_s1 + $0x220] sm:$0xff]  ;;  %v146_v53 = vld [vmem:[%s1145_s1 + $0x398] sm:$0xff] }
  0x38   :  { %602 = vmatprep.subr.mxu0 %v117_v40  ;;  %637 = vmatprep.subr.mxu1 %v149_v41  ;;  %v132_v47 = vld [vmem:[%s1145_s1 + $0x328] sm:$0xff]  ;;  %v131_v51 = vld [vmem:[%s1145_s1 + $0x320] sm:$0xff]  ;;  %v98_v54 = vld [vmem:[%s1145_s1 + $0x218] sm:$0xff]  ;;  %p667_p4 = pnand %p666_p3, %p660_p0 }
  0x39   :  { %603 = vmatpush3.msra.mxu0 %v101_v42  ;;  %638 = vmatpush3.msra.mxu1 %v133_v43  ;;  %v130_v55 = vld [vmem:[%s1145_s1 + $0x318] sm:$0xff]  ;;  %v113_v56 = vld [vmem:[%s1145_s1 + $0x290] sm:$0xff]  ;;  %v112_v60 = vld [vmem:[%s1145_s1 + $0x288] sm:$0xff] }
  0x3a   :  { %604 = vmatprep.subr.mxu0 %v116_v44  ;;  %639 = vmatprep.subr.mxu1 %v148_v45  ;;  %v145_v57 = vld [vmem:[%s1145_s1 + $0x390] sm:$0xff]  ;;  %v144_v61 = vld [vmem:[%s1145_s1 + $0x388] sm:$0xff]  ;;  %v111_v0 = vld [vmem:[%s1145_s1 + $0x280] sm:$0xff] }
  0x3b   :  { %605 = vmatpush3.msra.mxu0 %v100_v46  ;;  %640 = vmatpush3.msra.mxu1 %v132_v47  ;;  %v97_v58 = vld [vmem:[%s1145_s1 + $0x210] sm:$0xff]  ;;  %v96_v62 = vld [vmem:[%s1145_s1 + $0x208] sm:$0xff]  ;;  %v143_v1 = vld [vmem:[%s1145_s1 + $0x380] sm:$0xff] }
  0x3c   :  { %606 = vmatprep.subr.mxu0 %v115_v48  ;;  %641 = vmatprep.subr.mxu1 %v147_v49  ;;  %v129_v59 = vld [vmem:[%s1145_s1 + $0x310] sm:$0xff]  ;;  %v128_v63 = vld [vmem:[%s1145_s1 + $0x308] sm:$0xff]  ;;  %v95_v2 = vld [vmem:[%s1145_s1 + $0x200] sm:$0xff] }
  0x3d   :  { %607 = vmatpush3.msra.mxu0 %v99_v50  ;;  %642 = vmatpush3.msra.mxu1 %v131_v51  ;;  %v28_v3 = vld [vmem:[%s1144_s0 + $0x28] sm:$0x3f]  ;;  %v127_v4 = vld [vmem:[%s1145_s1 + $0x300] sm:$0xff]  ;;  %v30_v5 = vld [vmem:[%s1144_s0 + $0x38] sm:$0x3f] }
  0x3e   :  { %608 = vmatprep.subr.mxu0 %v114_v52  ;;  %643 = vmatprep.subr.mxu1 %v146_v53  ;;  %v27_v6 = vld [vmem:[%s1144_s0 + $0x20] sm:$0x3f]  ;;  %v29_v7 = vld [vmem:[%s1144_s0 + $0x30] sm:$0x3f] }
  0x3f   :  { %609 = vmatpush3.msra.mxu0 %v98_v54  ;;  %644 = vmatpush3.msra.mxu1 %v130_v55  ;;  %v511_v12 = vld [vmem:[%s1146_s2] ss:$0 sm:$0xff] }
  0x40   :  { %610 = vmatprep.subr.mxu0 %v113_v56  ;;  %645 = vmatprep.subr.mxu1 %v145_v57  ;;  %v512_v36 = vld [vmem:[%s1147_s3] ss:$0 sm:$0xff] }
  0x41   :  { %611 = vmatpush3.msra.mxu0 %v97_v58  ;;  %646 = vmatpush3.msra.mxu1 %v129_v59  ;;  %v513_v38 = vld [vmem:[%s1148_s4] ss:$0 sm:$0xff] }
  0x42   :  { %612 = vmatprep.subr.mxu0 %v112_v60  ;;  %647 = vmatprep.subr.mxu1 %v144_v61 }
  0x43   :  { %613 = vmatpush3.msra.mxu0 %v96_v62  ;;  %648 = vmatpush3.msra.mxu1 %v128_v63 }
  0x44   :  { %614 = vmatprep.subr.mxu0 %v111_v0  ;;  %649 = vmatprep.subr.mxu1 %v143_v1 }
  0x45   :  { %615 = vmatpush3.msra.mxu0 %v95_v2  ;;  %370 = vmatprep.mubr.f32.mxu0 %v28_v3 }
  0x46   :  { %650 = vmatpush3.msra.mxu1 %v127_v4  ;;  %440 = vmatprep.mubr.f32.mxu1 %v30_v5 }
  0x47   :  { %371 = vmatmul.mubr.f32.vlgmr.msra.gmra.mxu0 %v27_v6  ;;  %441 = vmatmul.mubr.f32.vlgmr.msra.gmra.mxu1 %v29_v7 }
  0xe4   :  { %v546_v8 = vpop.f32.mrf.mxu0 }
  0xe6   :  { %v581_v9 = vpop.f32.mrf.mxu1  ;;  %v547_v10 = vpop.f32.mrf.mxu0 }
  0xe7   :  { %v548_v11 = vadd.f32 %v547_v10, %v546_v8 }
  0xe8   :  { %v582_v13 = vpop.f32.mrf.mxu1 }
  0xe9   :  { %v233_v14 = vadd.f32 %v548_v11, %v511_v12  ;;  %v583_v15 = vadd.f32 %v582_v13, %v581_v9 }
  0xeb   :  { %v303_v20 = vadd.f32 %v583_v15, %v233_v14 }
 0x107   :  { %v616_v16 = vpop.f32.mrf.mxu0  ;;  %v651_v17 = vpop.f32.mrf.mxu1 }
 0x109   :  { %v617_v18 = vpop.f32.mrf.mxu0  ;;  %v652_v19 = vpop.f32.mrf.mxu1 }
 0x10a   :  { %v618_v21 = vadd.f32 %v617_v18, %v616_v16  ;;  %v653_v23 = vadd.f32 %v652_v19, %v651_v17 }
 0x10c   :  { %v373_v22 = vadd.f32 %v618_v21, %v303_v20 }
 0x10e   :  { %v443_v24 = vadd.f32 %v653_v23, %v373_v22 }
 0x110   :  { %v446_v25 = vmax.f32 %v443_v24, 0.0 }
 0x112   :  { %v450_v26 = vsel %vm449_vm0, %v446_v25, 0.0 }
 0x113   :  { %451 = vadd.xlane.f32.xlu0 %v450_v26 }
 0x19c   :  { %v452_v27 = vpop.xlane.xlu0 %451 }
 0x19d   :  { %v454_v28 = vmul.f32 0.03125, %v452_v27 }
 0x19f   :  { %v455_v29 = vsub.f32 %v446_v25, %v454_v28 }
 0x1a1   :  { %v456_v30 = vmul.f32 %v455_v29, %v455_v29 }
 0x1a3   :  { %v457_v31 = vsel %vm449_vm0, %v456_v30, 0.0 }
 0x1a4   :  { %458 = vadd.xlane.f32.xlu0 %v457_v31 }
 0x22d   :  { %v459_v32 = vpop.xlane.xlu0 %458 }
 0x22e   :  { %v460_v33 = vmul.f32 0.03125, %v459_v32 }
 0x230   :  { %v461_v34 = vadd.f32 1e-05, %v460_v33 }
 0x232   :  { %655 = vrsqrt.f32 %v461_v34 }
 0x23f   :  { %v656_v35 = vpop.eup %655 }
 0x240   :  { %v463_v37 = vmul.f32 %v656_v35, %v455_v29 }
 0x242   :  { %v470_v39 = vmul.f32 %v512_v36, %v463_v37 }
 0x244   :  { %v477_v40 = vadd.f32 %v513_v38, %v470_v39 }
 0x246   :  { %v479_v41 = vmul.f32 %v477_v40, %v477_v40  ;;  %478 = vst.msk [vmem:[#allocation2] sm:$0x3f] %vm449_vm0, %v477_v40 }
 0x248   :  { %v480_v42 = vsel %vm449_vm0, %v479_v41, 0.0 }
 0x249   :  { %481 = vadd.xlane.f32.xlu1 %v480_v42 }
 0x24a   :  { %670 = shalt.err (!%p667_p4)
}
 0x24b   :  { %502 = dma.vmem_to_hbm [thread:$0]  %s500_s9, 128, %s1149_s5, [#allocation3]   ;;  %vm491_vm3 = vcmask 5120  }
 0x2d2   :  { %v482_v43 = vpop.xlane.xlu1 %481 }
 0x2d3   :  { %657 = vrsqrt.f32 %v482_v43  ;;  %vm485_vm1 = vcmp.eq.f32.partialorder %v482_v43, inf  ;;  %v488_v46 = vand.u32 2147483648, %v482_v43  ;;  %vm487_vm2 = vcmp.eq.f32.partialorder %v482_v43, 0.0 }
 0x2e0   :  { %v658_v44 = vpop.eup %657 }
 0x2e1   :  { %v484_v45 = vmul.f32 %v658_v44, %v482_v43 }
 0x2e3   :  { %v486_v47 = vsel %vm485_vm1, %v482_v43, %v484_v45 }
 0x2e4   :  { %v489_v48 = vsel %vm487_vm2, %v488_v46, %v486_v47 }
 0x2e5   :  { %v490_v49 = vmax.f32 %v489_v48, 1e-08 }
 0x2e7   :  { %492 = vst.msk [vmem:[%s1150_s6] sm:$0x3f] %vm491_vm3, %v490_v49 }
 0x2e8   :  { %679 = dma.done.wait [#allocation3], 128  }
 0x2e9   :  { %680 = vsyncadd [#allocation3], 4294967168 }
 0x2ea   :  { %510 = vsyncpa [#allocation3], 1 }

</bundles_post_ra>
